<compile_context>
chip_gen: v6e
topology: v6e:2x2x1
jax: 0.10.0
libtpu: 0.0.40
codegen_flags: <defaults>
</compile_context>

<pallas_src>
import jax
import jax.numpy as jnp
from jax.experimental import pallas as pl
from jax.experimental.pallas import tpu as pltpu

LANE = 128
MAX_BLOCK_ROWS = 4096      # 4096 x 128 f32 = 2 MiB per input block
NUM_CORE_BLOCKS = 2        # leading "parallel" grid axis (v7x megacore split)
PAD_LOGIT = -1.0e4         # finite, so x*t=0 (no NaN); exp(-|x|) underflows to 0


def _round_up(a, b):
    return ((a + b - 1) // b) * b


def _make_loss_kernel(blk_rows):
    """Kernel with static block geometry baked in (no scalar prefetch needed)."""
    groups = blk_rows // 8

    def kernel(x_ref, t_ref, o_ref):
        # Output block is resident across the reduction axis -> init once per core.
        @pl.when(pl.program_id(1) == 0)
        def _():
            o_ref[...] = jnp.zeros_like(o_ref)

        x = x_ref[...].astype(jnp.float32)
        t = t_ref[...].astype(jnp.float32)

        # Shared transcendental: e = exp(-|x|)
        e = jnp.exp(-jnp.abs(x))
        # Numerically stable BCE-with-logits (same as PyTorch):
        #   max(x, 0) - x*t + log(1 + exp(-|x|))
        bce = jnp.maximum(x, 0.0) - x * t + jnp.log1p(e)
        # sigmoid(x) rebuilt from e:  x>=0 -> 1/(1+e);  x<0 -> e/(1+e)
        r = pl.reciprocal(1.0 + e, approx=True)     # single EUP vrcp
        s = jnp.where(x >= 0.0, r, e * r)

        # Fold each (blk_rows, 128) quantity to one vreg-shaped (8, 128) tile with
        # sublane-aligned adds (no XLU), then accumulate into the tiny resident
        # output block: 3 vreg loads + 3 vreg stores per step instead of 3*blk/8.
        def fold(v):
            return v.reshape(groups, 8, LANE).sum(axis=0)

        o_ref[0, 0] += fold(bce)       # sum of per-element BCE losses
        o_ref[0, 1] += fold(s * t)     # dice intersection
        o_ref[0, 2] += fold(s + t)     # union = sum(sigmoid) + sum(targets)

    return kernel


def _loss_partial_sums(x2, t2, blk_rows, steps):
    """Run the Pallas kernel over the block-aligned region of x2/t2."""
    in_block_bytes = blk_rows * LANE * (x2.dtype.itemsize + t2.dtype.itemsize)
    # 2x double-buffered inputs + tiny accumulator block + compiler headroom.
    vmem_limit = int(2 * in_block_bytes + (8 << 20))

    return pl.pallas_call(
        _make_loss_kernel(blk_rows),
        out_shape=jax.ShapeDtypeStruct((NUM_CORE_BLOCKS, 3, 8, LANE), jnp.float32),
        grid_spec=pltpu.PrefetchScalarGridSpec(
            num_scalar_prefetch=0,
            grid=(NUM_CORE_BLOCKS, steps),
            in_specs=[
                pl.BlockSpec((blk_rows, LANE), lambda c, i: (c * steps + i, 0)),
                pl.BlockSpec((blk_rows, LANE), lambda c, i: (c * steps + i, 0)),
            ],
            out_specs=pl.BlockSpec((1, 3, 8, LANE), lambda c, i: (c, 0, 0, 0)),
        ),
        compiler_params=pltpu.CompilerParams(
            dimension_semantics=("parallel", "arbitrary"),
            vmem_limit_bytes=vmem_limit),
    )(x2, t2)


def _tail_sums(x_t, t_t):
    """Tiny leftover region (a handful of rows) reduced in plain JAX."""
    x = x_t.astype(jnp.float32)
    t = t_t.astype(jnp.float32)
    bce = jnp.maximum(x, 0.0) - x * t + jnp.log1p(jnp.exp(-jnp.abs(x)))
    s = jax.nn.sigmoid(x)
    return jnp.stack([jnp.sum(bce), jnp.sum(s * t), jnp.sum(s) + jnp.sum(t)])


def combined_loss(outputs, targets, epoch, *, gamma=0.85, weight_dice=0.25,
                  smooth=1.0):
    """Forward pass of CombinedLoss. `epoch`/`gamma` do not affect the forward."""
    del epoch, gamma  # gamma only drives the LR scheduler, not the loss value

    n = outputs.size
    x = outputs.reshape(-1)
    t = targets.reshape(-1)

    rows_full = n // LANE

    if n % LANE == 0 and rows_full >= NUM_CORE_BLOCKS * 8:
        # Zero-copy path: bitcast reshape to (rows, 128); the kernel covers the
        # largest block-aligned row prefix; the small leftover row tail goes
        # through plain JAX (at most a few * 8 * steps rows).
        x2 = x.reshape(rows_full, LANE)
        t2 = t.reshape(rows_full, LANE)

        rows_per_core = rows_full // NUM_CORE_BLOCKS
        steps = -(-rows_per_core // MAX_BLOCK_ROWS)
        per_step = rows_per_core // steps
        # Granularity 32 keeps the block legal for int8/bf16 inputs too (the
        # in-kernel astype means callers can stream narrow dtypes for ~2x less HBM).
        gran = 32 if per_step >= 32 else 8
        blk_rows = (per_step // gran) * gran
        main_rows = NUM_CORE_BLOCKS * steps * blk_rows

        partials = _loss_partial_sums(x2, t2, blk_rows, steps)
        sums = jnp.sum(partials, axis=(0, 2, 3))   # (2,3,8,128) -> (3,), ~24 KiB
        if main_rows < rows_full:
            sums = sums + _tail_sums(x2[main_rows:], t2[main_rows:])
    else:
        # Fallback (tiny or non-128-aligned inputs): pad to the full grid.  Logits
        # padded with a large finite negative and targets with 0 contribute exactly
        # zero to every partial sum, so no in-kernel mask is needed.
        rows = -(-n // LANE)
        rows_per_core = -(-rows // NUM_CORE_BLOCKS)
        steps = -(-rows_per_core // MAX_BLOCK_ROWS)
        blk_rows = _round_up(-(-rows_per_core // steps), 8)
        padded_rows = NUM_CORE_BLOCKS * steps * blk_rows
        pad = padded_rows * LANE - n
        x2 = jnp.pad(x, (0, pad), constant_values=PAD_LOGIT).reshape(padded_rows, LANE)
        t2 = jnp.pad(t, (0, pad)).reshape(padded_rows, LANE)

        partials = _loss_partial_sums(x2, t2, blk_rows, steps)
        sums = jnp.sum(partials, axis=(0, 2, 3))

    bce_sum, inter, union = sums[0], sums[1], sums[2]

    loss_bce = bce_sum / jnp.float32(n)                    # mean reduction
    dice = (2.0 * inter + smooth) / (union + smooth)       # DiceLoss(logits=True)
    loss_dice = 1.0 - dice
    return loss_dice * weight_dice + loss_bce * (1.0 - weight_dice)


def _reference_combined_loss(outputs, targets, weight_dice=0.25, smooth=1.0):
    x = outputs.astype(jnp.float32)
    t = targets.astype(jnp.float32)
    bce = jnp.mean(jnp.maximum(x, 0.0) - x * t + jnp.log1p(jnp.exp(-jnp.abs(x))))
    s = jax.nn.sigmoid(x)
    inter = jnp.sum(s * t)
    union = jnp.sum(s) + jnp.sum(t)
    dice = (2.0 * inter + smooth) / (union + smooth)
    return (1.0 - dice) * weight_dice + bce * (1.0 - weight_dice)


if __name__ == "__main__":
    key = jax.random.PRNGKey(0)
    k1, k2 = jax.random.split(key)
    # Model logits and binary targets, NCHW (B=2, C=4, H=16, W=16)
    outputs = jax.random.normal(k1, (2, 4, 16, 16), dtype=jnp.float32)
    targets = (jax.random.uniform(k2, (2, 4, 16, 16)) > 0.5).astype(jnp.float32)
    epoch = 0

    loss = jax.block_until_ready(combined_loss(outputs, targets, epoch))
    ref = jax.block_until_ready(_reference_combined_loss(outputs, targets))
    # Tolerance accounts for pl.reciprocal(approx=True) (~2^-12 rel error on sigmoid,
    # which only touches the weight-0.25 dice term of the scalar loss).
    assert jnp.allclose(loss, ref, rtol=5e-3, atol=5e-3), (loss, ref)

    print("KERNEL_OK")
</pallas_src>

<mosaic_0001>
module attributes {stable_mosaic.version = 11 : i64} {
  func.func @kernel(%arg0: i32, %arg1: i32, %arg2: memref<8x128xf32, #tpu.memory_space<vmem>>, %arg3: memref<8x128xf32, #tpu.memory_space<vmem>>, %arg4: memref<1x3x8x128xf32, #tpu.memory_space<vmem>>) attributes {dimension_semantics = [#tpu.dimension_semantics<parallel>, #tpu.dimension_semantics<arbitrary>], iteration_bounds = array<i64: 2, 1>, scalar_prefetch = 0 : i64, scratch_operands = 0 : i64, tpu.core_type = #tpu.core_type<tc>, window_params = [{transform_indices = @transform_0, window_bounds = array<i64: 8, 128>}, {transform_indices = @transform_1, window_bounds = array<i64: 8, 128>}, {transform_indices = @transform_2, window_bounds = array<i64: 1, 3, 8, 128>}]} {
    %c0_i32 = arith.constant 0 : i32
    %0 = arith.cmpi eq, %arg1, %c0_i32 : i32
    %1 = arith.extui %0 : i1 to i32
    %c0_i32_0 = arith.constant 0 : i32
    %2 = arith.cmpi ne, %1, %c0_i32_0 : i32
    scf.if %2 {
      %cst_32 = arith.constant 0.000000e+00 : f32
      %48 = vector.broadcast %cst_32 : f32 to vector<1x3x8x128xf32>
      %c0_33 = arith.constant 0 : index
      %c0_34 = arith.constant 0 : index
      %c0_35 = arith.constant 0 : index
      %c0_36 = arith.constant 0 : index
      %49 = vector.load %arg4[%c0_33, %c0_34, %c0_35, %c0_36] : memref<1x3x8x128xf32, #tpu.memory_space<vmem>>, vector<1x3x8x128xf32>
      tpu.vector_store %arg4[%c0_33, %c0_34, %c0_35, %c0_36], %48 {strides = array<i32>} : memref<1x3x8x128xf32, #tpu.memory_space<vmem>>, vector<1x3x8x128xf32>,
    } else {
    }
    %c0 = arith.constant 0 : index
    %c0_1 = arith.constant 0 : index
    %3 = vector.load %arg2[%c0, %c0_1] : memref<8x128xf32, #tpu.memory_space<vmem>>, vector<8x128xf32>
    %c0_2 = arith.constant 0 : index
    %c0_3 = arith.constant 0 : index
    %4 = vector.load %arg3[%c0_2, %c0_3] : memref<8x128xf32, #tpu.memory_space<vmem>>, vector<8x128xf32>
    %5 = math.absf %3 : vector<8x128xf32>
    %cst = arith.constant 0.000000e+00 : f32
    %6 = vector.broadcast %cst : f32 to vector<8x128xf32>
    %7 = arith.subf %6, %5 : vector<8x128xf32>
    %8 = math.exp %7 : vector<8x128xf32>
    %cst_4 = arith.constant 0.000000e+00 : f32
    %9 = vector.broadcast %cst_4 : f32 to vector<8x128xf32>
    %10 = arith.maximumf %3, %9 : vector<8x128xf32>
    %11 = arith.mulf %3, %4 : vector<8x128xf32>
    %12 = arith.subf %10, %11 : vector<8x128xf32>
    %13 = math.log1p %8 : vector<8x128xf32>
    %14 = arith.addf %12, %13 : vector<8x128xf32>
    %cst_5 = arith.constant 1.000000e+00 : f32
    %15 = vector.broadcast %cst_5 : f32 to vector<8x128xf32>
    %16 = arith.addf %15, %8 : vector<8x128xf32>
    %17 = tpu.reciprocal %16 {approx = true} : vector<8x128xf32> -> vector<8x128xf32>
    %cst_6 = arith.constant 0.000000e+00 : f32
    %18 = vector.broadcast %cst_6 : f32 to vector<8x128xf32>
    %19 = arith.cmpf oge, %3, %18 : vector<8x128xf32>
    %20 = arith.mulf %8, %17 : vector<8x128xf32>
    %21 = arith.select %19, %17, %20 : vector<8x128xi1>, vector<8x128xf32>
    %c0_7 = arith.constant 0 : index
    %c0_8 = arith.constant 0 : index
    %c0_9 = arith.constant 0 : index
    %c0_10 = arith.constant 0 : index
    %22 = vector.load %arg4[%c0_7, %c0_8, %c0_9, %c0_10] : memref<1x3x8x128xf32, #tpu.memory_space<vmem>>, vector<1x1x8x128xf32>
    %23 = vector.shape_cast %22 : vector<1x1x8x128xf32> to vector<8x128xf32>
    %24 = vector.shape_cast %14 : vector<8x128xf32> to vector<1x8x128xf32>
    %cst_11 = arith.constant dense<0.000000e+00> : vector<8x128xf32>
    %25 = vector.multi_reduction <add>, %24, %cst_11 [0] : vector<1x8x128xf32> to vector<8x128xf32>
    %26 = arith.addf %23, %25 : vector<8x128xf32>
    %c0_12 = arith.constant 0 : index
    %c0_13 = arith.constant 0 : index
    %c0_14 = arith.constant 0 : index
    %c0_15 = arith.constant 0 : index
    %27 = vector.load %arg4[%c0_12, %c0_13, %c0_14, %c0_15] : memref<1x3x8x128xf32, #tpu.memory_space<vmem>>, vector<1x1x8x128xf32>
    %28 = vector.shape_cast %27 : vector<1x1x8x128xf32> to vector<8x128xf32>
    %29 = vector.shape_cast %26 : vector<8x128xf32> to vector<1x1x8x128xf32>
    tpu.vector_store %arg4[%c0_12, %c0_13, %c0_14, %c0_15], %29 {strides = array<i32>} : memref<1x3x8x128xf32, #tpu.memory_space<vmem>>, vector<1x1x8x128xf32>,
    %c0_16 = arith.constant 0 : index
    %c1 = arith.constant 1 : index
    %c0_17 = arith.constant 0 : index
    %c0_18 = arith.constant 0 : index
    %30 = vector.load %arg4[%c0_16, %c1, %c0_17, %c0_18] : memref<1x3x8x128xf32, #tpu.memory_space<vmem>>, vector<1x1x8x128xf32>
    %31 = vector.shape_cast %30 : vector<1x1x8x128xf32> to vector<8x128xf32>
    %32 = arith.mulf %21, %4 : vector<8x128xf32>
    %33 = vector.shape_cast %32 : vector<8x128xf32> to vector<1x8x128xf32>
    %cst_19 = arith.constant dense<0.000000e+00> : vector<8x128xf32>
    %34 = vector.multi_reduction <add>, %33, %cst_19 [0] : vector<1x8x128xf32> to vector<8x128xf32>
    %35 = arith.addf %31, %34 : vector<8x128xf32>
    %c0_20 = arith.constant 0 : index
    %c1_21 = arith.constant 1 : index
    %c0_22 = arith.constant 0 : index
    %c0_23 = arith.constant 0 : index
    %36 = vector.load %arg4[%c0_20, %c1_21, %c0_22, %c0_23] : memref<1x3x8x128xf32, #tpu.memory_space<vmem>>, vector<1x1x8x128xf32>
    %37 = vector.shape_cast %36 : vector<1x1x8x128xf32> to vector<8x128xf32>
    %38 = vector.shape_cast %35 : vector<8x128xf32> to vector<1x1x8x128xf32>
    tpu.vector_store %arg4[%c0_20, %c1_21, %c0_22, %c0_23], %38 {strides = array<i32>} : memref<1x3x8x128xf32, #tpu.memory_space<vmem>>, vector<1x1x8x128xf32>,
    %c0_24 = arith.constant 0 : index
    %c2 = arith.constant 2 : index
    %c0_25 = arith.constant 0 : index
    %c0_26 = arith.constant 0 : index
    %39 = vector.load %arg4[%c0_24, %c2, %c0_25, %c0_26] : memref<1x3x8x128xf32, #tpu.memory_space<vmem>>, vector<1x1x8x128xf32>
    %40 = vector.shape_cast %39 : vector<1x1x8x128xf32> to vector<8x128xf32>
    %41 = arith.addf %21, %4 : vector<8x128xf32>
    %42 = vector.shape_cast %41 : vector<8x128xf32> to vector<1x8x128xf32>
    %cst_27 = arith.constant dense<0.000000e+00> : vector<8x128xf32>
    %43 = vector.multi_reduction <add>, %42, %cst_27 [0] : vector<1x8x128xf32> to vector<8x128xf32>
    %44 = arith.addf %40, %43 : vector<8x128xf32>
    %c0_28 = arith.constant 0 : index
    %c2_29 = arith.constant 2 : index
    %c0_30 = arith.constant 0 : index
    %c0_31 = arith.constant 0 : index
    %45 = vector.load %arg4[%c0_28, %c2_29, %c0_30, %c0_31] : memref<1x3x8x128xf32, #tpu.memory_space<vmem>>, vector<1x1x8x128xf32>
    %46 = vector.shape_cast %45 : vector<1x1x8x128xf32> to vector<8x128xf32>
    %47 = vector.shape_cast %44 : vector<8x128xf32> to vector<1x1x8x128xf32>
    tpu.vector_store %arg4[%c0_28, %c2_29, %c0_30, %c0_31], %47 {strides = array<i32>} : memref<1x3x8x128xf32, #tpu.memory_space<vmem>>, vector<1x1x8x128xf32>,
    return
  }
  func.func @transform_0(%arg0: i32, %arg1: i32) -> (i32, i32) {
    %c1_i32 = arith.constant 1 : i32
    %0 = arith.muli %arg0, %c1_i32 : i32
    %1 = arith.addi %0, %arg1 : i32
    %c0_i32 = arith.constant 0 : i32
    %c0_i32_0 = arith.constant 0 : i32
    return %1, %c0_i32 : i32, i32
  }
  func.func @transform_1(%arg0: i32, %arg1: i32) -> (i32, i32) {
    %c1_i32 = arith.constant 1 : i32
    %0 = arith.muli %arg0, %c1_i32 : i32
    %1 = arith.addi %0, %arg1 : i32
    %c0_i32 = arith.constant 0 : i32
    %c0_i32_0 = arith.constant 0 : i32
    return %1, %c0_i32 : i32, i32
  }
  func.func @transform_2(%arg0: i32, %arg1: i32) -> (i32, i32, i32, i32) {
    %c0_i32 = arith.constant 0 : i32
    %c0_i32_0 = arith.constant 0 : i32
    %c0_i32_1 = arith.constant 0 : i32
    %c0_i32_2 = arith.constant 0 : i32
    return %arg0, %c0_i32, %c0_i32_0, %c0_i32_1 : i32, i32, i32, i32
  }
}

</mosaic_0001>

<bundles_post_ra>
// kernel: tpu_custom_call.1
= control target key start
LH: loop header
LB: loop body
LE: loop exit
PB: predicated region body
PF: predicated region fallthrough
CT: control target
= control target key end

     0   :  { %7 = vsyncpa [#allocation3], 0  ;;  %s817_s0 = inlined_call_operand.hbm [shape: f32[16,128], index: 0, kind: input, shape index: {}]   ;;  %s818_s1 = inlined_call_operand.hbm [shape: f32[16,128], index: 1, kind: input, shape index: {}]   ;;  %s819_s2 = inlined_call_operand.hbm [shape: f32[2,3,8,128], index: 2, kind: output, shape index: {}]  }
   0x1   :  { %9 = vsyncpa [#allocation3 + $0x1], 0 }
   0x2   :  { %10 = vsyncpa [#allocation6], 0 }
   0x3   :  { %12 = vsyncpa [#allocation6 + $0x1], 0 }
   0x4   :  { %13 = vsyncpa [#allocation4], 0 }
   0x5   :  { %15 = vsyncpa [#allocation4 + $0x1], 0  ;;  %s641_s9 = smov 0   ;;  %s643_s10 = smov 0  }
   0x6   :  { %s645_s11 = smov 0   ;;  %s647_s12 = smov 0  }
   0x7   :  { %s649_s13 = smov 0   ;;  %s651_s14 = smov 0  }
   0x8 LB: > { %s383_s15 = sadd.s32 4294967295, %s619_s14   ;;  %s384_s16 = sadd.s32 4294967294, %s619_s14   ;;  %s619_s14 = sphi %s651_s14, %s21_s14   ;;  %s615_s13 = sphi %s649_s13, %s831_s13   ;;  %s611_s12 = sphi %s647_s12, %s830_s12   ;;  %s607_s11 = sphi %s645_s11, %s829_s11   ;;  %s603_s10 = sphi %s643_s10, %s828_s10   ;;  %s599_s9 = sphi %s641_s9, %s827_s9  }
   0x9   : > { %s33_s17 = sadd.s32 1, %s615_s13  ;;  %s42_s18 = sadd.s32 1, %s607_s11 }
   0xa   : > { %p35_p0 = scmp.ge.s32.totalorder %s33_s17, 2  ;;  %p49_p1 = scmp.ne.s32.totalorder %s607_s11, %s603_s10 }
   0xb   : > { %p50_p2 = scmp.eq.s32.totalorder %s619_s14, 0  ;;  %p55_p3 = scmp.ne.s32.totalorder %s603_s10, %s599_s9 }
   0xc   : > { %s833_s17 = smov (%p35_p0, %s33_s17), 0  ;;  %p56_p5 = scmp.eq.s32.totalorder %s383_s15, 0 }
   0xd   : > { %p682_p4 = por %p50_p2, %p49_p1  ;;  %s39_s20 = ssub.s32 %s615_s13, %s833_s17 }
   0xe   : > { %p107_p6 = scmp.eq.s32.totalorder %s383_s15, 1  ;;  %p40_p7 = scmp.eq.s32.totalorder %s39_s20, 0 }
   0xf   : > { %p688_p8 = por %p56_p5, %p55_p3  ;;  %p113_p10 = scmp.eq.s32.totalorder %s384_s16, 1 }
  0x10   : > { %p692_p9 = por %p107_p6, %p49_p1  ;;  %p420_p13 = scmp.lt.s32.totalorder %s619_s14, 2 }
  0x11   : > { %s697_s23 = scalar_select %p40_p7, %s607_s11, %s42_s18  }
  0x12   : > { %p699_p11 = por %p113_p10, %p55_p3  ;;  %s706_s25 = sand.u32 1, %s607_s11  }
  0x13   : > { %s387_s26 = sshll.u32 %s706_s25, 3  ;;  %s388_s27 = sshll.u32 %s615_s13, 7 }
  0x14   : > { %s143_s30 = scalar_lea.hbm %s817_s0, %s388_s27  ;;  %s137_s3 = scalar_lea.vmem [#allocation2], %s387_s26 }
  0x15   : > { %s145_s4 = sshll.u32 %s137_s3, 4  ;;  %p715_p0 = pnand %p420_p13, %p682_p4  ;;  %s146_s4 = int_to_ptr.vmem [resolvable:$true] %s145_s4 }
  0x16   : > { %p391_p1 = scmp.ge.s32.totalorder %s619_s14, 1  ;;  %p169_p2 = scmp.lt.s32.totalorder %s619_s14, 3 }
  0x17   : > { %s134_s6 = scalar_lea.sflag [#allocation3], %s706_s25  ;;  %p481_p3 = pneg %p715_p0 }
  0x18   : > { %s492_s7 = scalar_lea.vmem %s146_s4, 128  ;;  %s621_s8 = smov [#allocation2]  }
  0x19   : > { %p493_p5 = scmp.ne.s32.totalorder %s146_s4, %s492_s7  ;;  %s497_s15 = sshll.u32 %s621_s8, 4  ;;  %s498_s15 = int_to_ptr.vmem [resolvable:$false] %s497_s15 }
  0x1a   : > { %s499_s16 = scalar_lea.vmem %s498_s15, 256  ;;  %p500_p4 = scmp.lt.s32.totalorder %s146_s4, %s498_s15 }
  0x1b   : > { %p495_p6 = pnand %p493_p5, %p481_p3  ;;  %p501_p10 = scmp.lt.s32.totalorder %s499_s16, %s492_s7 }
  0x1d   : > { %p496_p7 = pneg %p495_p6  ;;  %p502_p13 = por %p501_p10, %p500_p4 }
  0x1f   : > { %p503_p12 = pnand %p502_p13, %p496_p7 }
  0x21   : > { %506 = shalt.err (!%p503_p12)
}
  0x22   : > { %412 = dma.hbm_to_vmem [thread:$0]  (!%p715_p0), %s143_s30, 128, %s146_s4, %s134_s6  }
  0x23   : > { %p733_p5 = pnand %p391_p1, %p169_p2  ;;  %s162_s28 = scalar_lea.hbm %s818_s1, %s388_s27 }
  0x24   : > { %s156_s29 = scalar_lea.vmem [#allocation5], %s387_s26  ;;  %s153_s7 = scalar_lea.sflag [#allocation6], %s706_s25 }
  0x25   : > { %s164_s3 = sshll.u32 %s156_s29, 4  ;;  %s622_s30 = smov [#allocation5]   ;;  %s165_s3 = int_to_ptr.vmem [resolvable:$true] %s164_s3 }
  0x26   : > { %s520_s8 = scalar_lea.vmem %s165_s3, 128  ;;  %s525_s4 = sshll.u32 %s622_s30, 4  ;;  %s526_s4 = int_to_ptr.vmem [resolvable:$false] %s525_s4 }
  0x27   : > { %p521_p12 = scmp.ne.s32.totalorder %s165_s3, %s520_s8  ;;  %s527_s6 = scalar_lea.vmem %s526_s4, 256 }
  0x28   : > { %p528_p1 = scmp.lt.s32.totalorder %s165_s3, %s526_s4  ;;  %p529_p2 = scmp.lt.s32.totalorder %s527_s6, %s520_s8 }
  0x29   : > { %p523_p6 = pnand %p521_p12, %p481_p3 }
  0x2a   : > { %p530_p4 = por %p529_p2, %p528_p1 }
  0x2b   : > { %p524_p7 = pneg %p523_p6 }
  0x2d   : > { %p531_p10 = pnand %p530_p4, %p524_p7 }
  0x2f   : > { %534 = shalt.err (!%p531_p10)
}
  0x30   : > { %415 = dma.hbm_to_vmem [thread:$0]  (!%p715_p0), %s162_s28, 128, %s165_s3, %s153_s7  }
  0x31   : > { %173 = sbr.rel (%p733_p5) target bundleno = 114 (0x72), region = 28  ;;  %s749_s25 = sand.u32 (!%p733_p5), 1, %s603_s10  }
  0x32   : > { %s392_s26 = sshll.u32 (!%p733_p5), %s749_s25, 3  ;;  %s176_s27 = scalar_lea.sflag (!%p733_p5), [#allocation3], %s749_s25 }
  0x33   : > { %s179_s15 = scalar_lea.vmem (!%p733_p5), [#allocation2], %s392_s26 }
  0x36   : > { %586 = dma.done.wait (%p688_p8), %s176_s27, 128  }
  0x37   : > { %588 = vsyncadd (%p688_p8), %s176_s27, 4294967168  ;;  %s185_s5 = scalar_lea.sflag [#allocation6], %s749_s25  ;;  %s188_s16 = scalar_lea.vmem [#allocation5], %s392_s26 }
  0x38   : > { %590 = dma.done.wait (%p688_p8), %s185_s5, 128  }
  0x39   : > { %592 = vsyncadd (%p688_p8), %s185_s5, 4294967168  ;;  %v223_v0 = vld [vmem:[%s179_s15] sm:$0xff]  ;;  %v224_v7 = vld [vmem:[%s188_s16] sm:$0xff]  ;;  %s401_s18 = smul.u32 24, %s749_s25  ;;  %s623_s8 = smov [#allocation7]  }
  0x3a   : > { %v225_v1 = vand.u32 2147483647, %v223_v0  ;;  %v229_v9 = vmax.f32 %v223_v0, 0.0  ;;  %v230_v10 = vmul.f32 %v224_v7, %v223_v0  ;;  %vm244_vm1 = vcmp.ge.f32.partialorder %v223_v0, 0.0  ;;  %s402_s21 = smul.u32 384, %s611_s12  ;;  %s264_s12 = scalar_lea.sflag [#allocation4], %s749_s25 }
  0x3b   : > { %s213_s19 = scalar_lea.vmem [#allocation7], %s401_s18  ;;  %s539_s30 = sshll.u32 %s623_s8, 4  ;;  %s540_s30 = int_to_ptr.vmem [resolvable:$false] %s539_s30 }
  0x3c   : > { %v226_v2 = vsub.f32 0.0, %v225_v1  ;;  %v231_v14 = vsub.f32 %v229_v9, %v230_v10  ;;  %s277_s20 = sshll.u32 %s213_s19, 4  ;;  %s767_s3 = scalar_lea.hbm %s819_s2, %s402_s21  ;;  %s769_s20 = int_to_ptr.vmem [resolvable:$true] %s277_s20 }
  0x3d   : > { %s535_s7 = scalar_lea.vmem %s769_s20, 384  ;;  %s541_s4 = scalar_lea.vmem %s540_s30, 768 }
  0x3e   : > { %v227_v3 = vmul.f32 1.442695, %v226_v2  ;;  %p536_p8 = scmp.ne.s32.totalorder %s769_s20, %s535_s7  ;;  %p542_p13 = scmp.lt.s32.totalorder %s769_s20, %s540_s30 }
  0x3f   : > { %p543_p5 = scmp.lt.s32.totalorder %s541_s4, %s535_s7 }
  0x40   : > { %473 = vpow2.f32 %v227_v3  ;;  %p537_p0 = pnand %p536_p8, %p692_p9 }
  0x41   : > { %p544_p12 = por %p543_p5, %p542_p13 }
  0x42   : > { %p538_p3 = pneg %p537_p0 }
  0x44   : > { %p545_p6 = pnand %p544_p12, %p538_p3 }
  0x4d   : > { %v474_v4 = vpop.eup %473 }
  0x4e   : > { %v232_v5 = vadd.f32 1.0, %v474_v4  ;;  %v235_v6 = vmul.f32 -0.5, %v474_v4  ;;  %v238_v11 = vand.u32 2147483647, %v474_v4 }
  0x50   : > { %475 = vlog2.f32 %v232_v5  ;;  %v236_v8 = vadd.f32 1.0, %v235_v6  ;;  %vm239_vm0 = vcmp.lt.f32.partialorder %v238_v11, 0.0004427343 }
  0x51   : > { %477 = vrcp.f32 %v232_v5 }
  0x52   : > { %v237_v12 = vmul.f32 %v474_v4, %v236_v8 }
  0x5d   : > { %v476_v13 = vpop.eup %475 }
  0x5e   : > { %v478_v15 = vpop.eup %477  ;;  %v234_v16 = vmul.f32 0.6931472, %v476_v13 }
  0x5f   : > { %v245_v17 = vmul.f32 %v478_v15, %v474_v4 }
  0x60   : > { %v240_v18 = vsel %vm239_vm0, %v237_v12, %v234_v16 }
  0x61   : > { %v241_v19 = vadd.f32 %v240_v18, %v231_v14  ;;  %v246_v20 = vsel %vm244_vm1, %v478_v15, %v245_v17 }
  0x62   : > { %v253_v21 = vmul.f32 %v246_v20, %v224_v7  ;;  %v259_v22 = vadd.f32 %v246_v20, %v224_v7 }
  0x63   : > { %250 = vst [vmem:[%s213_s19] sm:$0xff] %v241_v19 }
  0x64   : > { %395 = vst [vmem:[%s213_s19 + $0x8] sm:$0xff] %v253_v21  ;;  %397 = vst [vmem:[%s213_s19 + $0x10] sm:$0xff] %v259_v22 }
  0x65   : > { %548 = shalt.err (!%p545_p6)
}
  0x66   : > { %s549_s6 = scalar_lea.hbm %s767_s3, 384  ;;  %s553_s15 = scalar_lea.hbm %s819_s2, 768 }
  0x67   : > { %p550_p7 = scmp.ne.s32.totalorder %s767_s3, %s549_s6  ;;  %p554_p4 = scmp.lt.s32.totalorder %s767_s3, %s819_s2 }
  0x68   : > { %p555_p10 = scmp.lt.s32.totalorder %s553_s15, %s549_s6 }
  0x69   : > { %p551_p1 = pnand %p550_p7, %p692_p9 }
  0x6a   : > { %p556_p8 = por %p555_p10, %p554_p4 }
  0x6b   : > { %p552_p2 = pneg %p551_p1 }
  0x6d   : > { %p557_p0 = pnand %p556_p8, %p552_p2 }
  0x6f   : > { %560 = shalt.err (!%p557_p0)
}
  0x70   : > { %s624_s18 = smov 128   ;;  %s625_s21 = smov 8  }
  0x71   : > { %407 = dma.vmem_to_hbm [thread:$0]  (%p692_p9), %s769_s20, 384, %s767_s3, %s264_s12, %s624_s18, %s624_s18, %s625_s21  }
  0x72 PF: > { %s292_s19 = sand.u32 1, %s599_s9   ;;  %p826_p3 = scmp.ge.s32.totalorder %s619_s14, 2 }
  0x73   : > { %s293_s28 = scalar_lea.sflag [#allocation4], %s292_s19 }
  0x74   : > { %p417_p13 = pnand %p826_p3, %p699_p11 }
  0x76   : > { %p418_p5 = pneg %p417_p13 }
  0x78   : > { %594 = dma.done.wait (%p418_p5), %s293_s28, 384  }
  0x79   : > { %596 = vsyncadd (%p418_p5), %s293_s28, 4294966912  ;;  %s21_s14 = sadd.s32 1, %s619_s14   ;;  %s827_s9 = smov %s603_s10 }
  0x7a   : > { %p18_p12 = scmp.ge.s32.totalorder %s21_s14, 4   ;;  %s828_s10 = smov %s607_s11 }
  0x7b   : > { %s829_s11 = smov %s697_s23  ;;  %s830_s12 = smov %s615_s13 }
  0x7c   : > { %s831_s13 = smov %s833_s17  ;;  %20 = sbr.rel (!%p18_p12) target bundleno = 8 (0x8), region = 92 }
  0x81   :  { %298 = vsyncpa [#allocation3], 1 }
  0x82   :  { %300 = vsyncpa [#allocation3 + $0x1], 1 }
  0x83   :  { %301 = vsyncpa [#allocation6], 1 }
  0x84   :  { %303 = vsyncpa [#allocation6 + $0x1], 1 }
  0x85   :  { %304 = vsyncpa [#allocation4], 1 }
  0x86   :  { %306 = vsyncpa [#allocation4 + $0x1], 1 }

</bundles_post_ra>
